<compile_context>
chip_gen: v7x
topology: tpu7x:2x2x1
jax: 0.10.0
libtpu: 0.0.40
codegen_flags: <defaults>
</compile_context>

<pallas_src>
import functools

import jax
import jax.numpy as jnp
from jax.experimental import pallas as pl
from jax.experimental.pallas import tpu as pltpu

BN_EPS = 1e-5
LANE = 128


def _round_up(n, m):
    return ((n + m - 1) // m) * m


def _vmem_limit_bytes():
    """Per-chip scoped VMEM limit with headroom (96 MiB v5e/v6e, 48 MiB v7x)."""
    try:
        cap = int(pltpu.get_tpu_info().vmem_capacity_bytes)
    except Exception:
        cap = 64 * 1024 * 1024
    return int(min(cap * 3 // 4, 96 * 1024 * 1024))


# ---------------------------------------------------------------------------
# Fused single-invocation kernel (batch fits VMEM)
# ---------------------------------------------------------------------------
def _fused_fcnn_kernel(*refs, n_hidden, b_true, b_pad, matmul_dtype):
    x_ref, o_ref = refs[0], refs[-1]
    wo_ref, bo_ref = refs[-3], refs[-2]

    a = x_ref[...].astype(jnp.float32)
    need_mask = b_pad != b_true
    if need_mask:
        row = jax.lax.broadcasted_iota(jnp.int32, (b_pad, 1), 0)
        mask = (row < b_true).astype(jnp.float32)
    inv_b = 1.0 / b_true

    for j in range(n_hidden):
        w_ref = refs[1 + 2 * j]
        slab_ref = refs[2 + 2 * j]                      # row0=bias,1=gamma,2=beta
        h = (jnp.dot(a.astype(matmul_dtype), w_ref[...],
                     preferred_element_type=jnp.float32)
             + slab_ref[0:1, :])
        hm = h * mask if need_mask else h
        mean = jnp.sum(hm, axis=0, keepdims=True) * inv_b
        var = jnp.maximum(
            jnp.sum(hm * h, axis=0, keepdims=True) * inv_b - mean * mean, 0.0)
        scale = slab_ref[1:2, :] * jax.lax.rsqrt(var + BN_EPS)
        shift = slab_ref[2:3, :] - mean * scale
        a = jnp.maximum(h * scale + shift, 0.0)

    o_ref[...] = (jnp.dot(a.astype(matmul_dtype), wo_ref[...],
                          preferred_element_type=jnp.float32) + bo_ref[...])


# ---------------------------------------------------------------------------
# Batch-tiled fallback kernels
# ---------------------------------------------------------------------------
def _bn_fold(psum, psq, pslab, inv_b):
    mean = psum * inv_b
    var = jnp.maximum(psq * inv_b - mean * mean, 0.0)
    scale = pslab[1:2, :] * jax.lax.rsqrt(var + BN_EPS)
    shift = pslab[2:3, :] - mean * scale
    return scale, shift


def _accumulate_stats(i, h, sum_ref, sq_ref, *, tb, b_true, nb, b_pad):
    """Per-feature sum / sum-of-squares; mask only on the last grid step."""

    @pl.when(i == 0)
    def _():
        sum_ref[...] = jnp.zeros_like(sum_ref)
        sq_ref[...] = jnp.zeros_like(sq_ref)

    if b_pad == b_true:
        sum_ref[...] += jnp.sum(h, axis=0, keepdims=True)
        sq_ref[...] += jnp.sum(h * h, axis=0, keepdims=True)
    else:
        last_valid = b_true - (nb - 1) * tb

        @pl.when(i < nb - 1)
        def _():
            sum_ref[...] += jnp.sum(h, axis=0, keepdims=True)
            sq_ref[...] += jnp.sum(h * h, axis=0, keepdims=True)

        @pl.when(i == nb - 1)
        def _():
            row = jax.lax.broadcasted_iota(jnp.int32, (tb, 1), 0)
            m = (row < last_valid).astype(jnp.float32)
            hm = h * m
            sum_ref[...] += jnp.sum(hm, axis=0, keepdims=True)
            sq_ref[...] += jnp.sum(hm * h, axis=0, keepdims=True)


def _first_layer_kernel(x_ref, w_ref, slab_ref, h_ref, sum_ref, sq_ref, *,
                        tb, b_true, nb, b_pad, matmul_dtype):
    i = pl.program_id(0)
    h = (jnp.dot(x_ref[...].astype(matmul_dtype), w_ref[...],
                 preferred_element_type=jnp.float32) + slab_ref[0:1, :])
    h_ref[...] = h.astype(h_ref.dtype)
    _accumulate_stats(i, h, sum_ref, sq_ref,
                      tb=tb, b_true=b_true, nb=nb, b_pad=b_pad)


def _hidden_layer_kernel(a_ref, psum_ref, psq_ref, pslab_ref, w_ref, slab_ref,
                         h_ref, sum_ref, sq_ref, fold_ref, *,
                         tb, b_true, nb, b_pad, matmul_dtype):
    i = pl.program_id(0)

    # BN fold of the previous layer computed once (grid axis is sequential).
    @pl.when(i == 0)
    def _():
        scale, shift = _bn_fold(psum_ref[...], psq_ref[...], pslab_ref[...],
                                1.0 / b_true)
        fold_ref[0:1, :] = scale
        fold_ref[1:2, :] = shift

    a = jnp.maximum(a_ref[...].astype(jnp.float32) * fold_ref[0:1, :]
                    + fold_ref[1:2, :], 0.0)
    h = (jnp.dot(a.astype(matmul_dtype), w_ref[...],
                 preferred_element_type=jnp.float32) + slab_ref[0:1, :])
    h_ref[...] = h.astype(h_ref.dtype)
    _accumulate_stats(i, h, sum_ref, sq_ref,
                      tb=tb, b_true=b_true, nb=nb, b_pad=b_pad)


def _output_layer_kernel(a_ref, psum_ref, psq_ref, pslab_ref, w_ref, b_ref,
                         o_ref, *, b_true, matmul_dtype):
    # Recompute the (cheap, (1,K)) fold per tile: keeps this kernel "parallel".
    scale, shift = _bn_fold(psum_ref[...], psq_ref[...], pslab_ref[...],
                            1.0 / b_true)
    a = jnp.maximum(a_ref[...].astype(jnp.float32) * scale + shift, 0.0)
    o_ref[...] = (jnp.dot(a.astype(matmul_dtype), w_ref[...],
                          preferred_element_type=jnp.float32) + b_ref[...])


# ---------------------------------------------------------------------------
# Wrapper
# ---------------------------------------------------------------------------
@functools.partial(jax.jit, static_argnames=("matmul_dtype", "max_batch_tile"))
def fcnn_forward(x, params, matmul_dtype=jnp.bfloat16, max_batch_tile=None):
    """params: flat list [w1,b1,g1,be1, ..., wL,bL,gL,beL, wo,bo] with W in
    PyTorch (out_features, in_features) layout and 1-D vectors."""
    batch, in_features = x.shape
    out_features = params[-2].shape[0]
    n_hidden = (len(params) - 2) // 4

    widths = [in_features] + [params[4 * j].shape[0] for j in range(n_hidden)]
    widths.append(out_features)
    pw = [_round_up(w, LANE) for w in widths]
    max_w = max(pw)
    w_isz = jnp.dtype(matmul_dtype).itemsize
    act_dtype = matmul_dtype
    vmem_limit = _vmem_limit_bytes()

    def pad2(a, r, c, dtype=jnp.float32):
        a = a.astype(jnp.float32)
        return jnp.pad(a, ((0, r - a.shape[0]), (0, c - a.shape[1]))).astype(dtype)

    # Host-side packing: pre-transposed (in, out) weights in matmul dtype;
    # per-layer (8, n) slab: row0 = bias, row1 = gamma, row2 = beta (f32).
    ws, slabs = [], []
    for j in range(n_hidden):
        ws.append(pad2(params[4 * j].T, pw[j], pw[j + 1], matmul_dtype))
        slabs.append(pad2(jnp.stack([params[4 * j + 1],
                                     params[4 * j + 2],
                                     params[4 * j + 3]]), 8, pw[j + 1]))
    wo = pad2(params[-2].T, pw[-2], pw[-1], matmul_dtype)
    bo = pad2(params[-1].reshape(1, -1), 1, pw[-1])

    weight_bytes = sum(pw[j] * pw[j + 1] for j in range(len(pw) - 1)) * w_isz
    slab_bytes = sum(8 * w * 4 for w in pw[1:])

    # --- Fully fused single-invocation path (the common case) -------------
    b_pad8 = _round_up(batch, 8)
    fused_bytes = (b_pad8 * pw[0] * 4 + b_pad8 * pw[-1] * 4
                   + weight_bytes + slab_bytes
                   + 4 * b_pad8 * max_w * 4)            # activation headroom
    use_fused = fused_bytes <= vmem_limit // 2
    if max_batch_tile is not None and b_pad8 > max_batch_tile:
        use_fused = False

    if use_fused:
        x_p = pad2(x, b_pad8, pw[0])
        ins = [x_p]
        for j in range(n_hidden):
            ins += [ws[j], slabs[j]]
        ins += [wo, bo]
        out = pl.pallas_call(
            functools.partial(_fused_fcnn_kernel, n_hidden=n_hidden,
                              b_true=batch, b_pad=b_pad8,
                              matmul_dtype=matmul_dtype),
            out_shape=jax.ShapeDtypeStruct((b_pad8, pw[-1]), jnp.float32),
            compiler_params=pltpu.CompilerParams(vmem_limit_bytes=vmem_limit),
        )(*ins)
        return out[:batch, :out_features]

    # --- Batch-tiled multi-kernel fallback ---------------------------------
    # Adaptive batch tile sized from the per-step VMEM footprint.
    row_bytes = 2 * 2 * max_w * 4        # in+out tile, double-buffered, f32
    budget = max(vmem_limit // 2 - 2 * (weight_bytes + slab_bytes),
                 row_bytes * 8)
    tb = max(8, min(_round_up(batch, 8), (budget // row_bytes) // 8 * 8, 4096))
    if max_batch_tile is not None:
        tb = max(8, min(tb, _round_up(max_batch_tile, 8)))
    b_pad = _round_up(batch, tb)
    nb = b_pad // tb

    cp_reduce = pltpu.CompilerParams(
        dimension_semantics=("arbitrary",), vmem_limit_bytes=vmem_limit)
    cp_parallel = pltpu.CompilerParams(
        dimension_semantics=("parallel",), vmem_limit_bytes=vmem_limit)

    def tile_spec(n):
        return pl.BlockSpec((tb, n), lambda i: (i, 0))

    def pinned(shape):
        return pl.BlockSpec(shape, lambda i: (0, 0))

    a = pad2(x, b_pad, pw[0])
    psum = psq = pslab = None
    kw = dict(tb=tb, b_true=batch, nb=nb, b_pad=b_pad, matmul_dtype=matmul_dtype)

    for j in range(n_hidden):
        k_dim, n_dim = pw[j], pw[j + 1]
        out_shape = (jax.ShapeDtypeStruct((b_pad, n_dim), act_dtype),
                     jax.ShapeDtypeStruct((1, n_dim), jnp.float32),
                     jax.ShapeDtypeStruct((1, n_dim), jnp.float32))
        out_specs = (tile_spec(n_dim), pinned((1, n_dim)), pinned((1, n_dim)))

        if j == 0:
            kernel = functools.partial(_first_layer_kernel, **kw)
            ins = (a, ws[j], slabs[j])
            in_specs = [tile_spec(k_dim), pinned((k_dim, n_dim)),
                        pinned((8, n_dim))]
            scratch = []
        else:
            kernel = functools.partial(_hidden_layer_kernel, **kw)
            ins = (a, psum, psq, pslab, ws[j], slabs[j])
            in_specs = [tile_spec(k_dim),
                        pinned((1, k_dim)), pinned((1, k_dim)),
                        pinned((8, k_dim)),
                        pinned((k_dim, n_dim)), pinned((8, n_dim))]
            scratch = [pltpu.VMEM((2, k_dim), jnp.float32)]

        a, psum, psq = pl.pallas_call(
            kernel,
            out_shape=out_shape,
            grid=(nb,),
            in_specs=in_specs,
            out_specs=out_specs,
            scratch_shapes=scratch,
            compiler_params=cp_reduce,
        )(*ins)
        pslab = slabs[j]

    k_dim, n_dim = pw[-2], pw[-1]
    out = pl.pallas_call(
        functools.partial(_output_layer_kernel, b_true=batch,
                          matmul_dtype=matmul_dtype),
        out_shape=jax.ShapeDtypeStruct((b_pad, n_dim), jnp.float32),
        grid=(nb,),
        in_specs=[tile_spec(k_dim),
                  pinned((1, k_dim)), pinned((1, k_dim)), pinned((8, k_dim)),
                  pinned((k_dim, n_dim)), pinned((1, n_dim))],
        out_specs=tile_spec(n_dim),
        compiler_params=cp_parallel,
    )(a, psum, psq, pslab, wo, bo)

    return out[:batch, :out_features]


# ---------------------------------------------------------------------------
# Parameter init + pure-JAX reference (sanity check)
# ---------------------------------------------------------------------------
def init_params(key, input_size, output_size, hidden_layers):
    """PyTorch-Linear-style uniform init; BN gamma=1, beta=0."""
    params = []
    sizes = [input_size] + list(hidden_layers)
    keys = jax.random.split(key, len(sizes))
    for i in range(len(sizes) - 1):
        fan_in, fan_out = sizes[i], sizes[i + 1]
        bound = 1.0 / jnp.sqrt(fan_in)
        kw_, kb = jax.random.split(keys[i])
        w = jax.random.uniform(kw_, (fan_out, fan_in), jnp.float32, -bound, bound)
        b = jax.random.uniform(kb, (fan_out,), jnp.float32, -bound, bound)
        params += [w, b, jnp.ones((fan_out,), jnp.float32),
                   jnp.zeros((fan_out,), jnp.float32)]
    fan_in = sizes[-1]
    bound = 1.0 / jnp.sqrt(fan_in)
    kw_, kb = jax.random.split(keys[-1])
    wo = jax.random.uniform(kw_, (output_size, fan_in), jnp.float32, -bound, bound)
    bo = jax.random.uniform(kb, (output_size,), jnp.float32, -bound, bound)
    return params + [wo, bo]


def reference_forward(x, params):
    n_hidden = (len(params) - 2) // 4
    h = x
    for j in range(n_hidden):
        w, b, g, be = params[4 * j:4 * j + 4]
        h = h @ w.T + b
        mean = jnp.mean(h, axis=0, keepdims=True)
        var = jnp.mean((h - mean) ** 2, axis=0, keepdims=True)
        h = (h - mean) / jnp.sqrt(var + BN_EPS) * g + be
        h = jnp.maximum(h, 0.0)
    return h @ params[-2].T + params[-1]


if __name__ == "__main__":
    key = jax.random.PRNGKey(0)
    k_x, k_p, k_x2 = jax.random.split(key, 3)

    batch = 8
    input_size = 4
    output_size = 3
    hidden_layers = [10, 10, 10]

    x = jax.random.normal(k_x, (batch, input_size), dtype=jnp.float32)
    params = init_params(k_p, input_size, output_size, hidden_layers)
    ref = reference_forward(x, params)

    # Fused single-kernel path, exact f32 arithmetic.
    out_f32 = jax.block_until_ready(
        fcnn_forward(x, params, matmul_dtype=jnp.float32))
    assert out_f32.shape == (batch, output_size)
    assert jnp.allclose(out_f32, ref, atol=1e-3, rtol=1e-3), \
        float(jnp.max(jnp.abs(out_f32 - ref)))

    # Fused single-kernel path, default bf16 MXU operands (loose tolerance).
    out_bf16 = jax.block_until_ready(fcnn_forward(x, params))
    assert out_bf16.shape == (batch, output_size)
    assert bool(jnp.all(jnp.isfinite(out_bf16)))
    assert float(jnp.max(jnp.abs(out_bf16 - ref))) < 0.25

    # Batch-tiled streaming path (forced small tile), exact f32 arithmetic,
    # batch not a multiple of the tile to exercise the last-step mask.
    batch2 = 90
    x2 = jax.random.normal(k_x2, (batch2, input_size), dtype=jnp.float32)
    ref2 = reference_forward(x2, params)
    out2 = jax.block_until_ready(
        fcnn_forward(x2, params, matmul_dtype=jnp.float32, max_batch_tile=32))
    assert out2.shape == (batch2, output_size)
    assert jnp.allclose(out2, ref2, atol=1e-3, rtol=1e-3), \
        float(jnp.max(jnp.abs(out2 - ref2)))

    print("KERNEL_OK")
</pallas_src>

<mosaic_0001>
module attributes {stable_mosaic.version = 11 : i64} {
  func.func @_fused_fcnn_kernel(%arg0: memref<8x128xf32, #tpu.memory_space<vmem>>, %arg1: memref<128x128xf32, #tpu.memory_space<vmem>>, %arg2: memref<8x128xf32, #tpu.memory_space<vmem>>, %arg3: memref<128x128xf32, #tpu.memory_space<vmem>>, %arg4: memref<8x128xf32, #tpu.memory_space<vmem>>, %arg5: memref<128x128xf32, #tpu.memory_space<vmem>>, %arg6: memref<8x128xf32, #tpu.memory_space<vmem>>, %arg7: memref<128x128xf32, #tpu.memory_space<vmem>>, %arg8: memref<1x128xf32, #tpu.memory_space<vmem>>, %arg9: memref<8x128xf32, #tpu.memory_space<vmem>>) attributes {dimension_semantics = [], scalar_prefetch = 0 : i64, scratch_operands = 0 : i64, tpu.core_type = #tpu.core_type<tc>} {
    %c0 = arith.constant 0 : index
    %c0_0 = arith.constant 0 : index
    %0 = vector.load %arg0[%c0, %c0_0] : memref<8x128xf32, #tpu.memory_space<vmem>>, vector<8x128xf32>
    %c0_1 = arith.constant 0 : index
    %c0_2 = arith.constant 0 : index
    %1 = vector.load %arg1[%c0_1, %c0_2] : memref<128x128xf32, #tpu.memory_space<vmem>>, vector<128x128xf32>
    %cst = arith.constant dense<0.000000e+00> : vector<8x128xf32>
    %2 = tpu.matmul %0, %1, %cst {dimension_numbers = #tpu.dot_dimension_numbers<[1], [0], [0], [1], [0, 0, 1, 1], [], []>} : vector<8x128xf32>, vector<128x128xf32>, vector<8x128xf32> -> vector<8x128xf32>
    %c0_3 = arith.constant 0 : index
    %c0_4 = arith.constant 0 : index
    %3 = vector.load %arg2[%c0_3, %c0_4] : memref<8x128xf32, #tpu.memory_space<vmem>>, vector<1x128xf32>
    %4 = vector.broadcast %3 : vector<1x128xf32> to vector<8x128xf32>
    %5 = arith.addf %2, %4 : vector<8x128xf32>
    %cst_5 = arith.constant dense<0.000000e+00> : vector<128xf32>
    %6 = vector.multi_reduction <add>, %5, %cst_5 [0] : vector<8x128xf32> to vector<128xf32>
    %7 = vector.shape_cast %6 : vector<128xf32> to vector<1x128xf32>
    %cst_6 = arith.constant 1.250000e-01 : f32
    %8 = vector.broadcast %cst_6 : f32 to vector<1x128xf32>
    %9 = arith.mulf %7, %8 : vector<1x128xf32>
    %10 = arith.mulf %5, %5 : vector<8x128xf32>
    %cst_7 = arith.constant dense<0.000000e+00> : vector<128xf32>
    %11 = vector.multi_reduction <add>, %10, %cst_7 [0] : vector<8x128xf32> to vector<128xf32>
    %12 = vector.shape_cast %11 : vector<128xf32> to vector<1x128xf32>
    %cst_8 = arith.constant 1.250000e-01 : f32
    %13 = vector.broadcast %cst_8 : f32 to vector<1x128xf32>
    %14 = arith.mulf %12, %13 : vector<1x128xf32>
    %15 = arith.mulf %9, %9 : vector<1x128xf32>
    %16 = arith.subf %14, %15 : vector<1x128xf32>
    %cst_9 = arith.constant 0.000000e+00 : f32
    %17 = vector.broadcast %cst_9 : f32 to vector<1x128xf32>
    %18 = arith.maximumf %16, %17 : vector<1x128xf32>
    %c1 = arith.constant 1 : index
    %c0_10 = arith.constant 0 : index
    %19 = vector.load %arg2[%c1, %c0_10] : memref<8x128xf32, #tpu.memory_space<vmem>>, vector<1x128xf32>
    %cst_11 = arith.constant 9.99999974E-6 : f32
    %20 = vector.broadcast %cst_11 : f32 to vector<1x128xf32>
    %21 = arith.addf %18, %20 : vector<1x128xf32>
    %22 = math.rsqrt %21 : vector<1x128xf32>
    %23 = arith.mulf %19, %22 : vector<1x128xf32>
    %c2 = arith.constant 2 : index
    %c0_12 = arith.constant 0 : index
    %24 = vector.load %arg2[%c2, %c0_12] : memref<8x128xf32, #tpu.memory_space<vmem>>, vector<1x128xf32>
    %25 = arith.mulf %9, %23 : vector<1x128xf32>
    %26 = arith.subf %24, %25 : vector<1x128xf32>
    %27 = vector.broadcast %23 : vector<1x128xf32> to vector<8x128xf32>
    %28 = arith.mulf %5, %27 : vector<8x128xf32>
    %29 = vector.broadcast %26 : vector<1x128xf32> to vector<8x128xf32>
    %30 = arith.addf %28, %29 : vector<8x128xf32>
    %cst_13 = arith.constant 0.000000e+00 : f32
    %31 = vector.broadcast %cst_13 : f32 to vector<8x128xf32>
    %32 = arith.maximumf %30, %31 : vector<8x128xf32>
    %c0_14 = arith.constant 0 : index
    %c0_15 = arith.constant 0 : index
    %33 = vector.load %arg3[%c0_14, %c0_15] : memref<128x128xf32, #tpu.memory_space<vmem>>, vector<128x128xf32>
    %cst_16 = arith.constant dense<0.000000e+00> : vector<8x128xf32>
    %34 = tpu.matmul %32, %33, %cst_16 {dimension_numbers = #tpu.dot_dimension_numbers<[1], [0], [0], [1], [0, 0, 1, 1], [], []>} : vector<8x128xf32>, vector<128x128xf32>, vector<8x128xf32> -> vector<8x128xf32>
    %c0_17 = arith.constant 0 : index
    %c0_18 = arith.constant 0 : index
    %35 = vector.load %arg4[%c0_17, %c0_18] : memref<8x128xf32, #tpu.memory_space<vmem>>, vector<1x128xf32>
    %36 = vector.broadcast %35 : vector<1x128xf32> to vector<8x128xf32>
    %37 = arith.addf %34, %36 : vector<8x128xf32>
    %cst_19 = arith.constant dense<0.000000e+00> : vector<128xf32>
    %38 = vector.multi_reduction <add>, %37, %cst_19 [0] : vector<8x128xf32> to vector<128xf32>
    %39 = vector.shape_cast %38 : vector<128xf32> to vector<1x128xf32>
    %cst_20 = arith.constant 1.250000e-01 : f32
    %40 = vector.broadcast %cst_20 : f32 to vector<1x128xf32>
    %41 = arith.mulf %39, %40 : vector<1x128xf32>
    %42 = arith.mulf %37, %37 : vector<8x128xf32>
    %cst_21 = arith.constant dense<0.000000e+00> : vector<128xf32>
    %43 = vector.multi_reduction <add>, %42, %cst_21 [0] : vector<8x128xf32> to vector<128xf32>
    %44 = vector.shape_cast %43 : vector<128xf32> to vector<1x128xf32>
    %cst_22 = arith.constant 1.250000e-01 : f32
    %45 = vector.broadcast %cst_22 : f32 to vector<1x128xf32>
    %46 = arith.mulf %44, %45 : vector<1x128xf32>
    %47 = arith.mulf %41, %41 : vector<1x128xf32>
    %48 = arith.subf %46, %47 : vector<1x128xf32>
    %cst_23 = arith.constant 0.000000e+00 : f32
    %49 = vector.broadcast %cst_23 : f32 to vector<1x128xf32>
    %50 = arith.maximumf %48, %49 : vector<1x128xf32>
    %c1_24 = arith.constant 1 : index
    %c0_25 = arith.constant 0 : index
    %51 = vector.load %arg4[%c1_24, %c0_25] : memref<8x128xf32, #tpu.memory_space<vmem>>, vector<1x128xf32>
    %cst_26 = arith.constant 9.99999974E-6 : f32
    %52 = vector.broadcast %cst_26 : f32 to vector<1x128xf32>
    %53 = arith.addf %50, %52 : vector<1x128xf32>
    %54 = math.rsqrt %53 : vector<1x128xf32>
    %55 = arith.mulf %51, %54 : vector<1x128xf32>
    %c2_27 = arith.constant 2 : index
    %c0_28 = arith.constant 0 : index
    %56 = vector.load %arg4[%c2_27, %c0_28] : memref<8x128xf32, #tpu.memory_space<vmem>>, vector<1x128xf32>
    %57 = arith.mulf %41, %55 : vector<1x128xf32>
    %58 = arith.subf %56, %57 : vector<1x128xf32>
    %59 = vector.broadcast %55 : vector<1x128xf32> to vector<8x128xf32>
    %60 = arith.mulf %37, %59 : vector<8x128xf32>
    %61 = vector.broadcast %58 : vector<1x128xf32> to vector<8x128xf32>
    %62 = arith.addf %60, %61 : vector<8x128xf32>
    %cst_29 = arith.constant 0.000000e+00 : f32
    %63 = vector.broadcast %cst_29 : f32 to vector<8x128xf32>
    %64 = arith.maximumf %62, %63 : vector<8x128xf32>
    %c0_30 = arith.constant 0 : index
    %c0_31 = arith.constant 0 : index
    %65 = vector.load %arg5[%c0_30, %c0_31] : memref<128x128xf32, #tpu.memory_space<vmem>>, vector<128x128xf32>
    %cst_32 = arith.constant dense<0.000000e+00> : vector<8x128xf32>
    %66 = tpu.matmul %64, %65, %cst_32 {dimension_numbers = #tpu.dot_dimension_numbers<[1], [0], [0], [1], [0, 0, 1, 1], [], []>} : vector<8x128xf32>, vector<128x128xf32>, vector<8x128xf32> -> vector<8x128xf32>
    %c0_33 = arith.constant 0 : index
    %c0_34 = arith.constant 0 : index
    %67 = vector.load %arg6[%c0_33, %c0_34] : memref<8x128xf32, #tpu.memory_space<vmem>>, vector<1x128xf32>
    %68 = vector.broadcast %67 : vector<1x128xf32> to vector<8x128xf32>
    %69 = arith.addf %66, %68 : vector<8x128xf32>
    %cst_35 = arith.constant dense<0.000000e+00> : vector<128xf32>
    %70 = vector.multi_reduction <add>, %69, %cst_35 [0] : vector<8x128xf32> to vector<128xf32>
    %71 = vector.shape_cast %70 : vector<128xf32> to vector<1x128xf32>
    %cst_36 = arith.constant 1.250000e-01 : f32
    %72 = vector.broadcast %cst_36 : f32 to vector<1x128xf32>
    %73 = arith.mulf %71, %72 : vector<1x128xf32>
    %74 = arith.mulf %69, %69 : vector<8x128xf32>
    %cst_37 = arith.constant dense<0.000000e+00> : vector<128xf32>
    %75 = vector.multi_reduction <add>, %74, %cst_37 [0] : vector<8x128xf32> to vector<128xf32>
    %76 = vector.shape_cast %75 : vector<128xf32> to vector<1x128xf32>
    %cst_38 = arith.constant 1.250000e-01 : f32
    %77 = vector.broadcast %cst_38 : f32 to vector<1x128xf32>
    %78 = arith.mulf %76, %77 : vector<1x128xf32>
    %79 = arith.mulf %73, %73 : vector<1x128xf32>
    %80 = arith.subf %78, %79 : vector<1x128xf32>
    %cst_39 = arith.constant 0.000000e+00 : f32
    %81 = vector.broadcast %cst_39 : f32 to vector<1x128xf32>
    %82 = arith.maximumf %80, %81 : vector<1x128xf32>
    %c1_40 = arith.constant 1 : index
    %c0_41 = arith.constant 0 : index
    %83 = vector.load %arg6[%c1_40, %c0_41] : memref<8x128xf32, #tpu.memory_space<vmem>>, vector<1x128xf32>
    %cst_42 = arith.constant 9.99999974E-6 : f32
    %84 = vector.broadcast %cst_42 : f32 to vector<1x128xf32>
    %85 = arith.addf %82, %84 : vector<1x128xf32>
    %86 = math.rsqrt %85 : vector<1x128xf32>
    %87 = arith.mulf %83, %86 : vector<1x128xf32>
    %c2_43 = arith.constant 2 : index
    %c0_44 = arith.constant 0 : index
    %88 = vector.load %arg6[%c2_43, %c0_44] : memref<8x128xf32, #tpu.memory_space<vmem>>, vector<1x128xf32>
    %89 = arith.mulf %73, %87 : vector<1x128xf32>
    %90 = arith.subf %88, %89 : vector<1x128xf32>
    %91 = vector.broadcast %87 : vector<1x128xf32> to vector<8x128xf32>
    %92 = arith.mulf %69, %91 : vector<8x128xf32>
    %93 = vector.broadcast %90 : vector<1x128xf32> to vector<8x128xf32>
    %94 = arith.addf %92, %93 : vector<8x128xf32>
    %cst_45 = arith.constant 0.000000e+00 : f32
    %95 = vector.broadcast %cst_45 : f32 to vector<8x128xf32>
    %96 = arith.maximumf %94, %95 : vector<8x128xf32>
    %c0_46 = arith.constant 0 : index
    %c0_47 = arith.constant 0 : index
    %97 = vector.load %arg7[%c0_46, %c0_47] : memref<128x128xf32, #tpu.memory_space<vmem>>, vector<128x128xf32>
    %cst_48 = arith.constant dense<0.000000e+00> : vector<8x128xf32>
    %98 = tpu.matmul %96, %97, %cst_48 {dimension_numbers = #tpu.dot_dimension_numbers<[1], [0], [0], [1], [0, 0, 1, 1], [], []>} : vector<8x128xf32>, vector<128x128xf32>, vector<8x128xf32> -> vector<8x128xf32>
    %c0_49 = arith.constant 0 : index
    %c0_50 = arith.constant 0 : index
    %99 = vector.load %arg8[%c0_49, %c0_50] : memref<1x128xf32, #tpu.memory_space<vmem>>, vector<1x128xf32>
    %100 = vector.broadcast %99 : vector<1x128xf32> to vector<8x128xf32>
    %101 = arith.addf %98, %100 : vector<8x128xf32>
    %c0_51 = arith.constant 0 : index
    %c0_52 = arith.constant 0 : index
    %102 = vector.load %arg9[%c0_51, %c0_52] : memref<8x128xf32, #tpu.memory_space<vmem>>, vector<8x128xf32>
    tpu.vector_store %arg9[%c0_51, %c0_52], %101 {strides = array<i32>} : memref<8x128xf32, #tpu.memory_space<vmem>>, vector<8x128xf32>,
    return
  }
}

</mosaic_0001>

<bundles_post_ra>
// kernel: fcnn_forward.1
= control target key start
LH: loop header
LB: loop body
LE: loop exit
PB: predicated region body
PF: predicated region fallthrough
CT: control target
= control target key end

     0   :  { %v829_v0 = vmov 0.0|0.0   ;;  %vm830_vm0 = vmmov 0   ;;  %v831_v4 = vmov 0.0   ;;  %s1158_s1 = inlined_call_operand.vmem [shape: f32[128,128], index: 1, kind: input, shape index: {}]   ;;  %s1159_s0 = inlined_call_operand.vmem [shape: f32[8,128], index: 0, kind: input, shape index: {}]   ;;  %s1160_s3 = inlined_call_operand.vmem [shape: f32[128,128], index: 3, kind: input, shape index: {}]   ;;  %s1161_s2 = inlined_call_operand.vmem [shape: f32[8,128], index: 2, kind: input, shape index: {}]   ;;  %s1162_s5 = inlined_call_operand.vmem [shape: f32[128,128], index: 5, kind: input, shape index: {}]   ;;  %s1163_s4 = inlined_call_operand.vmem [shape: f32[8,128], index: 4, kind: input, shape index: {}]   ;;  %s1164_s7 = inlined_call_operand.vmem [shape: f32[128,128], index: 7, kind: input, shape index: {}]   ;;  %s1165_s6 = inlined_call_operand.vmem [shape: f32[8,128], index: 6, kind: input, shape index: {}]   ;;  %s1166_s8 = inlined_call_operand.vmem [shape: f32[1,128], index: 8, kind: input, shape index: {}]   ;;  %s1167_s9 = inlined_call_operand.vmem [shape: f32[8,128], index: 9, kind: output, shape index: {}]  }
   0x1   :  { %724 = vmatprep.subr.bf16.mxu0 %v829_v0  ;;  %v33_v1 = vld [vmem:[%s1158_s1] sm:$0xff]  ;;  %v34_v2 = vld [vmem:[%s1158_s1 + $0x8] sm:$0xff]  ;;  %v35_v3 = vld [vmem:[%s1158_s1 + $0x10] sm:$0xff]  ;;  %616 = vmatprep.mubr.msk.f32.mxu0 %vm830_vm0, %v831_v4 }
   0x2   :  { %v725_v5 = vpack.c.bf16 %v34_v2, %v33_v1  ;;  %v36_v6 = vld [vmem:[%s1158_s1 + $0x18] sm:$0xff]  ;;  %748 = vmatprep.subr.bf16.mxu1 %v829_v0  ;;  %651 = vmatprep.mubr.msk.f32.mxu1 %vm830_vm0, %v831_v4  ;;  %v37_v8 = vld [vmem:[%s1158_s1 + $0x20] sm:$0xff]  ;;  %v38_v9 = vld [vmem:[%s1158_s1 + $0x28] sm:$0xff] }
   0x3   :  { %v728_v7 = vpack.c.bf16 %v36_v6, %v35_v3  ;;  %v731_v10 = vpack.c.bf16 %v38_v9, %v37_v8  ;;  %v39_v11 = vld [vmem:[%s1158_s1 + $0x30] sm:$0xff]  ;;  %v40_v12 = vld [vmem:[%s1158_s1 + $0x38] sm:$0xff]  ;;  %v41_v14 = vld [vmem:[%s1158_s1 + $0x40] sm:$0xff] }
   0x4   :  { %726 = vmatpush3.bf16.msra.mxu0 %v725_v5  ;;  %v734_v13 = vpack.c.bf16 %v40_v12, %v39_v11  ;;  %v42_v15 = vld [vmem:[%s1158_s1 + $0x48] sm:$0xff]  ;;  %v43_v17 = vld [vmem:[%s1158_s1 + $0x50] sm:$0xff]  ;;  %v44_v18 = vld [vmem:[%s1158_s1 + $0x58] sm:$0xff]  ;;  %v149_v12 = vlaneseq }
   0x5   :  { %727 = vmatprep.subr.bf16.mxu0 %v829_v0  ;;  %v737_v16 = vpack.c.bf16 %v42_v15, %v41_v14  ;;  %v740_v19 = vpack.c.bf16 %v44_v18, %v43_v17  ;;  %v45_v20 = vld [vmem:[%s1158_s1 + $0x60] sm:$0xff]  ;;  %v46_v21 = vld [vmem:[%s1158_s1 + $0x68] sm:$0xff]  ;;  %v47_v23 = vld [vmem:[%s1158_s1 + $0x70] sm:$0xff] }
   0x6   :  { %v743_v22 = vpack.c.bf16 %v46_v21, %v45_v20  ;;  %v48_v24 = vld [vmem:[%s1158_s1 + $0x78] sm:$0xff]  ;;  %v32_v26 = vld [vmem:[%s1159_s0] sm:$0xff]  ;;  %v161_v28 = vld [vmem:[%s1160_s3 + $0x8] sm:$0xff] }
   0x7   :  { %v746_v25 = vpack.c.bf16 %v48_v24, %v47_v23  ;;  %v160_v27 = vld [vmem:[%s1160_s3] sm:$0xff]  ;;  %v162_v30 = vld [vmem:[%s1160_s3 + $0x10] sm:$0xff]  ;;  %v163_v31 = vld [vmem:[%s1160_s3 + $0x18] sm:$0xff] }
   0x8   :  { %729 = vmatpush3.bf16.msra.mxu0 %v728_v7  ;;  %v749_v29 = vpack.c.bf16 %v161_v28, %v160_v27  ;;  %v752_v32 = vpack.c.bf16 %v163_v31, %v162_v30  ;;  %v164_v33 = vld [vmem:[%s1160_s3 + $0x20] sm:$0xff]  ;;  %v165_v34 = vld [vmem:[%s1160_s3 + $0x28] sm:$0xff]  ;;  %v166_v36 = vld [vmem:[%s1160_s3 + $0x30] sm:$0xff] }
   0x9   :  { %730 = vmatprep.subr.bf16.mxu0 %v829_v0  ;;  %v755_v35 = vpack.c.bf16 %v165_v34, %v164_v33  ;;  %v167_v37 = vld [vmem:[%s1160_s3 + $0x38] sm:$0xff]  ;;  %v168_v39 = vld [vmem:[%s1160_s3 + $0x40] sm:$0xff]  ;;  %v169_v40 = vld [vmem:[%s1160_s3 + $0x48] sm:$0xff] }
   0xa   :  { %750 = vmatpush3.bf16.msra.mxu1 %v749_v29  ;;  %v758_v38 = vpack.c.bf16 %v167_v37, %v166_v36  ;;  %v761_v41 = vpack.c.bf16 %v169_v40, %v168_v39  ;;  %v170_v42 = vld [vmem:[%s1160_s3 + $0x50] sm:$0xff]  ;;  %v171_v43 = vld [vmem:[%s1160_s3 + $0x58] sm:$0xff]  ;;  %v172_v45 = vld [vmem:[%s1160_s3 + $0x60] sm:$0xff] }
   0xb   :  { %751 = vmatprep.subr.bf16.mxu1 %v829_v0  ;;  %v764_v44 = vpack.c.bf16 %v171_v43, %v170_v42  ;;  %v173_v46 = vld [vmem:[%s1160_s3 + $0x68] sm:$0xff]  ;;  %v174_v48 = vld [vmem:[%s1160_s3 + $0x70] sm:$0xff]  ;;  %v175_v49 = vld [vmem:[%s1160_s3 + $0x78] sm:$0xff] }
   0xc   :  { %732 = vmatpush3.bf16.msra.mxu0 %v731_v10  ;;  %v767_v47 = vpack.c.bf16 %v173_v46, %v172_v45  ;;  %v770_v50 = vpack.c.bf16 %v175_v49, %v174_v48  ;;  %v512_v51 = vld [vmem:[%s1161_s2] ss:$0 sm:$0xff]  ;;  %v142_v14 = vld [vmem:[%s1161_s2 + $0x1] sm:$0x1]  ;;  %v146_v18 = vld [vmem:[%s1161_s2 + $0x2] sm:$0x1] }
   0xd   :  { %733 = vmatprep.subr.bf16.mxu0 %v829_v0  ;;  %v288_v27 = vld [vmem:[%s1162_s5 + $0x8] sm:$0xff]  ;;  %v289_v29 = vld [vmem:[%s1162_s5 + $0x10] sm:$0xff]  ;;  %v291_v31 = vld [vmem:[%s1162_s5 + $0x20] sm:$0xff] }
   0xe   :  { %753 = vmatpush3.bf16.msra.mxu1 %v752_v32  ;;  %v292_v32 = vld [vmem:[%s1162_s5 + $0x28] sm:$0xff]  ;;  %v293_v34 = vld [vmem:[%s1162_s5 + $0x30] sm:$0xff]  ;;  %v295_v37 = vld [vmem:[%s1162_s5 + $0x40] sm:$0xff] }
   0xf   :  { %754 = vmatprep.subr.bf16.mxu1 %v829_v0  ;;  %v779_v33 = vpack.c.bf16 %v292_v32, %v291_v31  ;;  %v297_v40 = vld [vmem:[%s1162_s5 + $0x50] sm:$0xff]  ;;  %v299_v43 = vld [vmem:[%s1162_s5 + $0x60] sm:$0xff]  ;;  %v421_v31 = vld [vmem:[%s1164_s7 + $0x38] sm:$0xff] }
  0x10   :  { %735 = vmatpush3.bf16.msra.mxu0 %v734_v13  ;;  %v150_v13 = vshrl.u32 %v149_v12, 7  ;;  %v301_v46 = vld [vmem:[%s1162_s5 + $0x70] sm:$0xff]  ;;  %v513_v49 = vld [vmem:[%s1163_s4] ss:$0 sm:$0xff] }
  0x11   :  { %736 = vmatprep.subr.bf16.mxu0 %v829_v0 }
  0x12   :  { %756 = vmatpush3.bf16.msra.mxu1 %v755_v35  ;;  %v1011_v15 = vsub.s32 0, %v150_v13  ;;  %v294_v35 = vld [vmem:[%s1162_s5 + $0x38] sm:$0xff]  ;;  %v273_v13 = vld [vmem:[%s1163_s4 + $0x2] sm:$0x1] }
  0x13   :  { %757 = vmatprep.subr.bf16.mxu1 %v829_v0  ;;  %v782_v36 = vpack.c.bf16 %v294_v35, %v293_v34  ;;  %v423_v34 = vld [vmem:[%s1164_s7 + $0x48] sm:$0xff] }
  0x14   :  { %738 = vmatpush3.bf16.msra.mxu0 %v737_v16 }
  0x15   :  { %739 = vmatprep.subr.bf16.mxu0 %v829_v0 }
  0x16   :  { %759 = vmatpush3.bf16.msra.mxu1 %v758_v38  ;;  %v296_v38 = vld [vmem:[%s1162_s5 + $0x48] sm:$0xff] }
  0x17   :  { %760 = vmatprep.subr.bf16.mxu1 %v829_v0  ;;  %v785_v39 = vpack.c.bf16 %v296_v38, %v295_v37  ;;  %v425_v37 = vld [vmem:[%s1164_s7 + $0x58] sm:$0xff] }
  0x18   :  { %741 = vmatpush3.bf16.msra.mxu0 %v740_v19 }
  0x19   :  { %742 = vmatprep.subr.bf16.mxu0 %v829_v0 }
  0x1a   :  { %762 = vmatpush3.bf16.msra.mxu1 %v761_v41  ;;  %v298_v41 = vld [vmem:[%s1162_s5 + $0x58] sm:$0xff] }
  0x1b   :  { %763 = vmatprep.subr.bf16.mxu1 %v829_v0  ;;  %v788_v42 = vpack.c.bf16 %v298_v41, %v297_v40  ;;  %v427_v40 = vld [vmem:[%s1164_s7 + $0x68] sm:$0xff] }
  0x1c   :  { %744 = vmatpush3.bf16.msra.mxu0 %v743_v22 }
  0x1d   :  { %745 = vmatprep.subr.bf16.mxu0 %v829_v0 }
  0x1e   :  { %765 = vmatpush3.bf16.msra.mxu1 %v764_v44  ;;  %v300_v44 = vld [vmem:[%s1162_s5 + $0x68] sm:$0xff] }
  0x1f   :  { %766 = vmatprep.subr.bf16.mxu1 %v829_v0  ;;  %v791_v45 = vpack.c.bf16 %v300_v44, %v299_v43  ;;  %v429_v43 = vld [vmem:[%s1164_s7 + $0x78] sm:$0xff] }
  0x20   :  { %747 = vmatpush3.bf16.msra.mxu0 %v746_v25 }
  0x21   :  { %772 = vmatprep.subr.bf16.mxu0 %v829_v0 }
  0x22   :  { %768 = vmatpush3.bf16.msra.mxu1 %v767_v47  ;;  %v302_v47 = vld [vmem:[%s1162_s5 + $0x78] sm:$0xff] }
  0x23   :  { %617 = vmatmul.mubr.f32.vlgmr.msra.gmra.mrb[0].mxu0 %v32_v26  ;;  %769 = vmatprep.subr.bf16.mxu1 %v829_v0  ;;  %v287_v26 = vld [vmem:[%s1162_s5] sm:$0xff]  ;;  %v794_v48 = vpack.c.bf16 %v302_v47, %v301_v46 }
  0x24   :  { %686 = vmatprep.mubr.msk.f32.mxu0 %vm830_vm0, %v831_v4  ;;  %v773_v28 = vpack.c.bf16 %v288_v27, %v287_v26  ;;  %v417_v26 = vld [vmem:[%s1164_s7 + $0x18] sm:$0xff] }
  0x26   :  { %771 = vmatpush3.bf16.msra.mxu1 %v770_v50  ;;  %774 = vmatpush3.bf16.msra.mxu0 %v773_v28  ;;  %v418_v28 = vld [vmem:[%s1164_s7 + $0x20] sm:$0xff] }
  0x27   :  { %796 = vmatprep.subr.bf16.mxu1 %v829_v0  ;;  %775 = vmatprep.subr.bf16.mxu0 %v829_v0 }
  0xf6   :  { %v120_v52 = vpop.f32.mrb[0].mxu0 }
  0xf7   :  { %v121_v53 = vadd.f32 %v512_v51, %v120_v52  ;;  %v618_v54 = vpop.f32.mrb[1].mxu0 }
  0xf9   :  { %v124_v55 = vrot.slane %v121_v53, 4  ;;  %v131_v56 = vmul.f32 %v121_v53, %v121_v53 }
  0xfb   :  { %v125_v57 = vadd.f32 %v124_v55, %v121_v53  ;;  %v132_v58 = vrot.slane %v131_v56, 4 }
  0xfd   :  { %v126_v59 = vrot.slane %v125_v57, 2  ;;  %v133_v60 = vadd.f32 %v132_v58, %v131_v56 }
  0xff   :  { %v127_v61 = vadd.f32 %v126_v59, %v125_v57  ;;  %v134_v62 = vrot.slane %v133_v60, 2 }
 0x101   :  { %v128_v63 = vrot.slane %v127_v61, 1  ;;  %v135_v1 = vadd.f32 %v134_v62, %v133_v60 }
 0x103   :  { %v129_v2 = vadd.f32 %v128_v63, %v127_v61  ;;  %v136_v3 = vrot.slane %v135_v1, 1 }
 0x105   :  { %v130_v5 = vmul.f32 0.125, %v129_v2  ;;  %v137_v6 = vadd.f32 %v136_v3, %v135_v1 }
 0x107   :  { %v138_v7 = vmul.f32 0.125, %v137_v6  ;;  %v139_v8 = vmul.f32 %v130_v5, %v130_v5 }
 0x109   :  { %v140_v9 = vsub.f32 %v138_v7, %v139_v8 }
 0x10b   :  { %v141_v10 = vmax.f32 %v140_v9, 0.0 }
 0x10d   :  { %v143_v11 = vadd.f32 1e-05, %v141_v10  ;;  %v269_v10 = vld [vmem:[%s1163_s4 + $0x1] sm:$0x1] }
 0x10f   :  { %823 = vrsqrt.f32 %v143_v11 }
 0x119   :  { %v824_v16 = vpop.eup %823 }
 0x11a   :  { %v145_v17 = vmul.f32 %v824_v16, %v142_v14 }
 0x11c   :  { %v147_v19 = vmul.f32 %v145_v17, %v130_v5  ;;  %v152_v20 = vrot.slane %v145_v17, %v1011_v15 }
 0x11e   :  { %v148_v21 = vsub.f32 %v146_v18, %v147_v19  ;;  %v153_v22 = vmul.f32 %v152_v20, %v121_v53 }
 0x120   :  { %v157_v23 = vrot.slane %v148_v21, %v1011_v15 }
 0x122   :  { %v158_v24 = vadd.f32 %v157_v23, %v153_v22  ;;  %v414_v22 = vld [vmem:[%s1164_s7] sm:$0xff]  ;;  %v415_v23 = vld [vmem:[%s1164_s7 + $0x8] sm:$0xff] }
 0x124   :  { %v159_v25 = vmax.f32 %v158_v24, 0.0  ;;  %v797_v24 = vpack.c.bf16 %v415_v23, %v414_v22 }
 0x126   :  { %652 = vmatmul.mubr.f32.vlgmr.msra.gmra.mrb[0].mxu1 %v159_v25  ;;  %v416_v25 = vld [vmem:[%s1164_s7 + $0x10] sm:$0xff] }
 0x127   :  { %721 = vmatprep.mubr.msk.f32.mxu1 %vm830_vm0, %v831_v4  ;;  %v290_v4 = vld [vmem:[%s1162_s5 + $0x18] sm:$0xff]  ;;  %798 = vmatpush3.bf16.msra.mxu1 %v797_v24  ;;  %v800_v27 = vpack.c.bf16 %v417_v26, %v416_v25 }
 0x128   :  { %v776_v30 = vpack.c.bf16 %v290_v4, %v289_v29  ;;  %799 = vmatprep.subr.bf16.mxu1 %v829_v0  ;;  %v419_v29 = vld [vmem:[%s1164_s7 + $0x28] sm:$0xff] }
 0x129   :  { %v803_v4 = vpack.c.bf16 %v419_v29, %v418_v28 }
 0x12a   :  { %777 = vmatpush3.bf16.msra.mxu0 %v776_v30  ;;  %v420_v30 = vld [vmem:[%s1164_s7 + $0x30] sm:$0xff] }
 0x12b   :  { %778 = vmatprep.subr.bf16.mxu0 %v829_v0  ;;  %801 = vmatpush3.bf16.msra.mxu1 %v800_v27  ;;  %v806_v32 = vpack.c.bf16 %v421_v31, %v420_v30 }
 0x12c   :  { %802 = vmatprep.subr.bf16.mxu1 %v829_v0 }
 0x12e   :  { %780 = vmatpush3.bf16.msra.mxu0 %v779_v33  ;;  %v422_v33 = vld [vmem:[%s1164_s7 + $0x40] sm:$0xff] }
 0x12f   :  { %781 = vmatprep.subr.bf16.mxu0 %v829_v0  ;;  %804 = vmatpush3.bf16.msra.mxu1 %v803_v4  ;;  %v809_v35 = vpack.c.bf16 %v423_v34, %v422_v33 }
 0x130   :  { %805 = vmatprep.subr.bf16.mxu1 %v829_v0 }
 0x132   :  { %783 = vmatpush3.bf16.msra.mxu0 %v782_v36  ;;  %v424_v36 = vld [vmem:[%s1164_s7 + $0x50] sm:$0xff] }
 0x133   :  { %784 = vmatprep.subr.bf16.mxu0 %v829_v0  ;;  %807 = vmatpush3.bf16.msra.mxu1 %v806_v32  ;;  %v812_v38 = vpack.c.bf16 %v425_v37, %v424_v36 }
 0x134   :  { %808 = vmatprep.subr.bf16.mxu1 %v829_v0 }
 0x136   :  { %786 = vmatpush3.bf16.msra.mxu0 %v785_v39  ;;  %v426_v39 = vld [vmem:[%s1164_s7 + $0x60] sm:$0xff] }
 0x137   :  { %787 = vmatprep.subr.bf16.mxu0 %v829_v0  ;;  %810 = vmatpush3.bf16.msra.mxu1 %v809_v35  ;;  %v815_v41 = vpack.c.bf16 %v427_v40, %v426_v39 }
 0x138   :  { %811 = vmatprep.subr.bf16.mxu1 %v829_v0 }
 0x13a   :  { %789 = vmatpush3.bf16.msra.mxu0 %v788_v42  ;;  %v428_v42 = vld [vmem:[%s1164_s7 + $0x70] sm:$0xff] }
 0x13b   :  { %790 = vmatprep.subr.bf16.mxu0 %v829_v0  ;;  %813 = vmatpush3.bf16.msra.mxu1 %v812_v38  ;;  %v818_v44 = vpack.c.bf16 %v429_v43, %v428_v42 }
 0x13c   :  { %814 = vmatprep.subr.bf16.mxu1 %v829_v0 }
 0x13e   :  { %792 = vmatpush3.bf16.msra.mxu0 %v791_v45  ;;  %v514_v45 = vld [vmem:[%s1165_s6] ss:$0 sm:$0xff] }
 0x13f   :  { %793 = vmatprep.subr.bf16.mxu0 %v829_v0  ;;  %816 = vmatpush3.bf16.msra.mxu1 %v815_v41 }
 0x140   :  { %817 = vmatprep.subr.bf16.mxu1 %v829_v0 }
 0x142   :  { %795 = vmatpush3.bf16.msra.mxu0 %v794_v48 }
 0x143   :  { %819 = vmatpush3.bf16.msra.mxu1 %v818_v44 }
 0x1f9   :  { %v247_v50 = vpop.f32.mrb[0].mxu1 }
 0x1fa   :  { %v248_v51 = vadd.f32 %v513_v49, %v247_v50  ;;  %v653_v52 = vpop.f32.mrb[1].mxu1 }
 0x1fc   :  { %v251_v53 = vrot.slane %v248_v51, 4  ;;  %v258_v54 = vmul.f32 %v248_v51, %v248_v51 }
 0x1fe   :  { %v252_v55 = vadd.f32 %v251_v53, %v248_v51  ;;  %v259_v56 = vrot.slane %v258_v54, 4 }
 0x200   :  { %v253_v57 = vrot.slane %v252_v55, 2  ;;  %v260_v58 = vadd.f32 %v259_v56, %v258_v54 }
 0x202   :  { %v254_v59 = vadd.f32 %v253_v57, %v252_v55  ;;  %v261_v60 = vrot.slane %v260_v58, 2 }
 0x204   :  { %v255_v61 = vrot.slane %v254_v59, 1  ;;  %v262_v62 = vadd.f32 %v261_v60, %v260_v58 }
 0x206   :  { %v256_v63 = vadd.f32 %v255_v61, %v254_v59  ;;  %v263_v1 = vrot.slane %v262_v62, 1 }
 0x208   :  { %v257_v2 = vmul.f32 0.125, %v256_v63  ;;  %v264_v3 = vadd.f32 %v263_v1, %v262_v62 }
 0x20a   :  { %v265_v5 = vmul.f32 0.125, %v264_v3  ;;  %v266_v6 = vmul.f32 %v257_v2, %v257_v2 }
 0x20c   :  { %v267_v7 = vsub.f32 %v265_v5, %v266_v6  ;;  %v396_v5 = vld [vmem:[%s1165_s6 + $0x1] sm:$0x1] }
 0x20e   :  { %v268_v8 = vmax.f32 %v267_v7, 0.0 }
 0x210   :  { %v270_v9 = vadd.f32 1e-05, %v268_v8  ;;  %v400_v8 = vld [vmem:[%s1165_s6 + $0x2] sm:$0x1] }
 0x212   :  { %825 = vrsqrt.f32 %v270_v9 }
 0x21c   :  { %v826_v11 = vpop.eup %825 }
 0x21d   :  { %v272_v12 = vmul.f32 %v826_v11, %v269_v10 }
 0x21f   :  { %v274_v14 = vmul.f32 %v272_v12, %v257_v2  ;;  %v279_v16 = vrot.slane %v272_v12, %v1011_v15 }
 0x221   :  { %v275_v17 = vsub.f32 %v273_v13, %v274_v14  ;;  %v280_v18 = vmul.f32 %v279_v16, %v248_v51 }
 0x223   :  { %v284_v19 = vrot.slane %v275_v17, %v1011_v15  ;;  %v515_v17 = vld [vmem:[%s1166_s8] ss:$0 sm:$0xff] }
 0x225   :  { %v285_v20 = vadd.f32 %v284_v19, %v280_v18 }
 0x227   :  { %v286_v21 = vmax.f32 %v285_v20, 0.0 }
 0x229   :  { %687 = vmatmul.mubr.f32.vlgmr.msra.gmra.mrb[2].mxu0 %v286_v21 }
 0x2fc   :  { %v374_v46 = vpop.f32.mrb[2].mxu0 }
 0x2fd   :  { %v375_v47 = vadd.f32 %v514_v45, %v374_v46  ;;  %v688_v48 = vpop.f32.mrb[3].mxu0 }
 0x2ff   :  { %v378_v49 = vrot.slane %v375_v47, 4  ;;  %v385_v50 = vmul.f32 %v375_v47, %v375_v47 }
 0x301   :  { %v379_v0 = vadd.f32 %v378_v49, %v375_v47  ;;  %v386_v51 = vrot.slane %v385_v50, 4 }
 0x303   :  { %v380_v52 = vrot.slane %v379_v0, 2  ;;  %v387_v53 = vadd.f32 %v386_v51, %v385_v50 }
 0x305   :  { %v381_v54 = vadd.f32 %v380_v52, %v379_v0  ;;  %v388_v55 = vrot.slane %v387_v53, 2 }
 0x307   :  { %v382_v56 = vrot.slane %v381_v54, 1  ;;  %v389_v57 = vadd.f32 %v388_v55, %v387_v53 }
 0x309   :  { %v383_v58 = vadd.f32 %v382_v56, %v381_v54  ;;  %v390_v59 = vrot.slane %v389_v57, 1 }
 0x30b   :  { %v384_v60 = vmul.f32 0.125, %v383_v58  ;;  %v391_v61 = vadd.f32 %v390_v59, %v389_v57 }
 0x30d   :  { %v392_v62 = vmul.f32 0.125, %v391_v61  ;;  %v393_v63 = vmul.f32 %v384_v60, %v384_v60 }
 0x30f   :  { %v394_v1 = vsub.f32 %v392_v62, %v393_v63 }
 0x311   :  { %v395_v2 = vmax.f32 %v394_v1, 0.0 }
 0x313   :  { %v397_v3 = vadd.f32 1e-05, %v395_v2 }
 0x315   :  { %827 = vrsqrt.f32 %v397_v3 }
 0x31f   :  { %v828_v6 = vpop.eup %827 }
 0x320   :  { %v399_v7 = vmul.f32 %v828_v6, %v396_v5 }
 0x322   :  { %v401_v9 = vmul.f32 %v399_v7, %v384_v60  ;;  %v406_v10 = vrot.slane %v399_v7, %v1011_v15 }
 0x324   :  { %v402_v11 = vsub.f32 %v400_v8, %v401_v9  ;;  %v407_v12 = vmul.f32 %v406_v10, %v375_v47 }
 0x326   :  { %v411_v13 = vrot.slane %v402_v11, %v1011_v15 }
 0x328   :  { %v412_v14 = vadd.f32 %v411_v13, %v407_v12 }
 0x32a   :  { %v413_v16 = vmax.f32 %v412_v14, 0.0 }
 0x32c   :  { %722 = vmatmul.mubr.f32.vlgmr.msra.gmra.mrb[2].mxu1 %v413_v16 }
 0x3ff   :  { %v503_v18 = vpop.f32.mrb[2].mxu1 }
 0x400   :  { %v504_v19 = vadd.f32 %v515_v17, %v503_v18  ;;  %v723_v20 = vpop.f32.mrb[3].mxu1 }
 0x402   :  { %507 = vst [vmem:[%s1167_s9] sm:$0xff] %v504_v19 }

</bundles_post_ra>
